<compile_context>
chip_gen: v5e
topology: v5e:2x2
jax: 0.10.0
libtpu: 0.0.40
codegen_flags: <defaults>
</compile_context>

<pallas_src>
import math

import jax
import jax.numpy as jnp
from jax.experimental import pallas as pl
from jax.experimental.pallas import tpu as pltpu

_LANE = 128
_MAX_LANE = 8192
_TARGET_TILE_BYTES = 4 << 20       # ~4 MiB tiles (see header comment)
_VMEM_LIMIT_BYTES = 32 << 20       # explicit: v5e scoped default is only 16 MiB


def _sublane(itemsize: int) -> int:
    # f32 -> 8, bf16/f16 -> 16, int8/fp8 -> 32 (packed sublanes).
    return max(8, 32 // max(1, itemsize))


# ----------------------------------------------------------------------------- kernels
def _add_pe_kernel(x_ref, pe_ref, o_ref):
    # Identical 2-D tile shapes (batch dim squeezed) -> plain VPU add.
    o_ref[...] = x_ref[...] + pe_ref[...]


def _add_pe_bcast_kernel(x_ref, pe_ref, o_ref):
    # x/out tiles carry a leading batch dim; pe broadcasts over it (leading-dim
    # broadcast is layout-free on the VPU).
    o_ref[...] = x_ref[...] + pe_ref[...][None, :, :]


# ----------------------------------------------------------------------------- helpers
def make_pe(dim: int, max_seq_len: int = 2048, base: int = 10000) -> jnp.ndarray:
    """Deterministic construction of the module's `pe` buffer (plain JAX glue)."""
    position = jnp.arange(max_seq_len, dtype=jnp.float32)[:, None]          # (L, 1)
    div_term = jnp.exp(
        jnp.arange(0, dim, 2, dtype=jnp.float32) * (-math.log(base) / dim)  # (D/2,)
    )
    angles = position * div_term                                            # (L, D/2)
    pe = jnp.zeros((max_seq_len, dim), dtype=jnp.float32)
    pe = pe.at[:, 0::2].set(jnp.sin(angles))
    pe = pe.at[:, 1::2].set(jnp.cos(angles))
    return pe


def _lane_dense_view(L: int):
    """View the flattened S*D axis as (R, C) with C a large multiple of 128."""
    if L % _LANE != 0:
        return None
    c = _LANE
    while c * 2 <= _MAX_LANE and L % (c * 2) == 0:
        c *= 2
    return L // c, c


def _single_buffered_spec(block_shape, index_map):
    """pe is reused across the whole inner loop -> one VMEM buffer is enough.

    Degrades gracefully to the default (double-buffered) spec if this Pallas
    version does not expose pipeline_mode / Buffered.
    """
    buffered = getattr(pl, "Buffered", None)
    if buffered is not None:
        try:
            return pl.BlockSpec(block_shape, index_map, pipeline_mode=buffered(1))
        except TypeError:
            pass
    return pl.BlockSpec(block_shape, index_map)


def _pick_row_tile(rows: int, row_bytes: int, sublane: int) -> int:
    """Largest row tile <= ~_TARGET_TILE_BYTES, multiple of `sublane`, preferring
    an exact divisor of `rows` so there is no ragged (lane-masked) tail."""
    target_rows = max(1, _TARGET_TILE_BYTES // max(1, row_bytes))
    if rows <= target_rows:
        return rows
    tile = max(sublane, (target_rows // sublane) * sublane)
    t = tile
    while t >= sublane:
        if rows % t == 0:
            return t
        t -= sublane
    return tile      # ragged tail; Pallas masks the partial block (safe for add)


# ----------------------------------------------------------------------------- forward paths
def _forward_flat(x, pe, R, C, donate_x):
    B, S, D = x.shape
    itemsize = jnp.dtype(x.dtype).itemsize
    sub = _sublane(itemsize)
    x2 = x.reshape(B, R, C)
    # Tiny one-time materialization (S*D elements) for the lane-dense view;
    # negligible next to the B*S*D bytes of x/out traffic.
    pe2 = pe[:S].reshape(R, C).astype(x.dtype)
    slab_bytes = R * C * itemsize
    aliases = {0: 0} if donate_x else {}

    if slab_bytes <= _TARGET_TILE_BYTES:
        # -------- small per-batch slab: pack several batch elements per tile so
        # DMAs stay ~MiB-sized instead of one tiny grid step per batch element.
        b_tile = max(1, min(B, _TARGET_TILE_BYTES // max(1, slab_bytes)))
        out2 = pl.pallas_call(
            _add_pe_bcast_kernel,
            out_shape=jax.ShapeDtypeStruct((B, R, C), x.dtype),
            grid_spec=pltpu.PrefetchScalarGridSpec(
                num_scalar_prefetch=0,
                grid=(pl.cdiv(B, b_tile),),
                in_specs=[
                    pl.BlockSpec((b_tile, R, C), lambda b: (b, 0, 0)),
                    # pe is the same block for every grid step -> single buffer.
                    _single_buffered_spec((R, C), lambda b: (0, 0)),
                ],
                out_specs=pl.BlockSpec((b_tile, R, C), lambda b: (b, 0, 0)),
            ),
            compiler_params=pltpu.CompilerParams(
                dimension_semantics=("parallel",),
                vmem_limit_bytes=_VMEM_LIMIT_BYTES,
            ),
            input_output_aliases=aliases,
        )(x2, pe2)
        return out2.reshape(B, S, D)

    # -------- large per-batch slab: tile rows of the lane-dense view.
    r_tile = _pick_row_tile(R, C * itemsize, sub)
    out2 = pl.pallas_call(
        _add_pe_kernel,
        out_shape=jax.ShapeDtypeStruct((B, R, C), x.dtype),
        grid_spec=pltpu.PrefetchScalarGridSpec(
            num_scalar_prefetch=0,
            # B innermost: pe block index is constant across it -> pe DMA'd once
            # per row tile instead of once per (row tile, batch) pair.
            grid=(pl.cdiv(R, r_tile), B),
            in_specs=[
                # Batch dim squeezed (None) -> kernel sees (r_tile, C).
                pl.BlockSpec((None, r_tile, C), lambda r, b: (b, r, 0)),
                _single_buffered_spec((r_tile, C), lambda r, b: (r, 0)),
            ],
            out_specs=pl.BlockSpec((None, r_tile, C), lambda r, b: (b, r, 0)),
        ),
        compiler_params=pltpu.CompilerParams(
            # "arbitrary" on the inner B axis guarantees the sequential ordering
            # the pe re-DMA skip relies on; measured-neutral on single-TC chips.
            dimension_semantics=("parallel", "arbitrary"),
            vmem_limit_bytes=_VMEM_LIMIT_BYTES,
        ),
        input_output_aliases=aliases,
    )(x2, pe2)
    return out2.reshape(B, S, D)


def _forward_fallback(x, pe, donate_x):
    # S*D not a multiple of 128: correct but lane-masked stores.  S axis is tiled
    # so long sequences never exceed scoped VMEM and pipelining overlap survives.
    B, S, D = x.shape
    itemsize = jnp.dtype(x.dtype).itemsize
    sub = _sublane(itemsize)
    pe_s = pe[:S].astype(x.dtype)
    s_tile = _pick_row_tile(S, D * itemsize, sub)
    aliases = {0: 0} if donate_x else {}

    return pl.pallas_call(
        _add_pe_kernel,
        out_shape=jax.ShapeDtypeStruct((B, S, D), x.dtype),
        grid_spec=pltpu.PrefetchScalarGridSpec(
            num_scalar_prefetch=0,
            grid=(pl.cdiv(S, s_tile), B),
            in_specs=[
                pl.BlockSpec((None, s_tile, D), lambda s, b: (b, s, 0)),
                _single_buffered_spec((s_tile, D), lambda s, b: (s, 0)),
            ],
            out_specs=pl.BlockSpec((None, s_tile, D), lambda s, b: (b, s, 0)),
        ),
        compiler_params=pltpu.CompilerParams(
            dimension_semantics=("parallel", "arbitrary"),
            vmem_limit_bytes=_VMEM_LIMIT_BYTES,
        ),
        input_output_aliases=aliases,
    )(x, pe_s)


def rotary_position_embedding_forward(x: jnp.ndarray, pe: jnp.ndarray,
                                       donate_x: bool = False) -> jnp.ndarray:
    """x: (B, S, D); pe: (max_seq_len, D)  ->  x + pe[:S] broadcast over batch.

    Set donate_x=True only if the caller donates x (aliases the output onto the
    input buffer, saving the extra B*S*D HBM output allocation).
    """
    _, S, D = x.shape
    view = _lane_dense_view(S * D)
    if view is None:
        return _forward_fallback(x, pe, donate_x)
    R, C = view
    return _forward_flat(x, pe, R, C, donate_x)


if __name__ == "__main__":
    MAX_SEQ_LEN, BASE = 2048, 10000

    # 1) Lane-dense path with batch-packed tiles (shapes from the module's forward).
    B, S, D = 2, 8, 32
    key = jax.random.PRNGKey(0)
    x = jax.random.normal(key, (B, S, D), dtype=jnp.float32)
    pe = make_pe(D, MAX_SEQ_LEN, BASE)
    out = jax.block_until_ready(rotary_position_embedding_forward(x, pe))
    ref = x + pe[:S][None, :, :]
    assert out.shape == (B, S, D)
    assert jnp.allclose(out, ref, atol=1e-6), "mismatch vs reference (lane-dense path)"

    # 2) Lane-masked fallback path (S*D not a multiple of 128).
    B2, S2, D2 = 2, 8, 24
    x_f = jax.random.normal(jax.random.PRNGKey(0), (B2, S2, D2), dtype=jnp.float32)
    pe_f = make_pe(D2, MAX_SEQ_LEN, BASE)
    out_f = jax.block_until_ready(rotary_position_embedding_forward(x_f, pe_f))
    ref_f = x_f + pe_f[:S2][None, :, :]
    assert jnp.allclose(out_f, ref_f, atol=1e-6), "mismatch vs reference (fallback path)"

    # 3) bf16 path (halves HBM traffic when the surrounding model tolerates it).
    x_b = jax.random.normal(jax.random.PRNGKey(0), (B, S, D),
                            dtype=jnp.float32).astype(jnp.bfloat16)
    out_b = jax.block_until_ready(rotary_position_embedding_forward(x_b, pe))
    ref_b = x_b.astype(jnp.float32) + pe[:S][None, :, :]
    assert jnp.allclose(out_b.astype(jnp.float32), ref_b, atol=3e-2), \
        "mismatch vs reference (bf16 path)"

    print("KERNEL_OK")
</pallas_src>

<mosaic_0001>
module attributes {stable_mosaic.version = 11 : i64} {
  func.func @_add_pe_bcast_kernel(%arg0: i32, %arg1: memref<2x1x256xf32, #tpu.memory_space<vmem>>, %arg2: memref<1x256xf32, #tpu.memory_space<vmem>>, %arg3: memref<2x1x256xf32, #tpu.memory_space<vmem>>) attributes {dimension_semantics = [#tpu.dimension_semantics<parallel>], iteration_bounds = array<i64: 1>, scalar_prefetch = 0 : i64, scratch_operands = 0 : i64, tpu.core_type = #tpu.core_type<tc>, window_params = [{transform_indices = @transform_0, window_bounds = array<i64: 2, 1, 256>}, {pipeline_mode = #tpu.pipeline_mode<synchronous>, transform_indices = @transform_1, window_bounds = array<i64: 1, 256>}, {transform_indices = @transform_2, window_bounds = array<i64: 2, 1, 256>}]} {
    %c0 = arith.constant 0 : index
    %c0_0 = arith.constant 0 : index
    %c0_1 = arith.constant 0 : index
    %0 = vector.load %arg1[%c0, %c0_0, %c0_1] : memref<2x1x256xf32, #tpu.memory_space<vmem>>, vector<2x1x256xf32>
    %c0_2 = arith.constant 0 : index
    %c0_3 = arith.constant 0 : index
    %1 = vector.load %arg2[%c0_2, %c0_3] : memref<1x256xf32, #tpu.memory_space<vmem>>, vector<1x256xf32>
    %2 = vector.shape_cast %1 : vector<1x256xf32> to vector<1x1x256xf32>
    %3 = vector.broadcast %2 : vector<1x1x256xf32> to vector<2x1x256xf32>
    %4 = arith.addf %0, %3 : vector<2x1x256xf32>
    %c0_4 = arith.constant 0 : index
    %c0_5 = arith.constant 0 : index
    %c0_6 = arith.constant 0 : index
    %5 = vector.load %arg3[%c0_4, %c0_5, %c0_6] : memref<2x1x256xf32, #tpu.memory_space<vmem>>, vector<2x1x256xf32>
    tpu.vector_store %arg3[%c0_4, %c0_5, %c0_6], %4 {strides = array<i32>} : memref<2x1x256xf32, #tpu.memory_space<vmem>>, vector<2x1x256xf32>,
    return
  }
  func.func @transform_0(%arg0: i32) -> (i32, i32, i32) {
    %c0_i32 = arith.constant 0 : i32
    %c0_i32_0 = arith.constant 0 : i32
    %c0_i32_1 = arith.constant 0 : i32
    return %arg0, %c0_i32, %c0_i32_0 : i32, i32, i32
  }
  func.func @transform_1(%arg0: i32) -> (i32, i32) {
    %c0_i32 = arith.constant 0 : i32
    %c0_i32_0 = arith.constant 0 : i32
    %c0_i32_1 = arith.constant 0 : i32
    return %c0_i32, %c0_i32_0 : i32, i32
  }
  func.func @transform_2(%arg0: i32) -> (i32, i32, i32) {
    %c0_i32 = arith.constant 0 : i32
    %c0_i32_0 = arith.constant 0 : i32
    %c0_i32_1 = arith.constant 0 : i32
    return %arg0, %c0_i32, %c0_i32_0 : i32, i32, i32
  }
}

</mosaic_0001>

<bundles_post_ra>
// kernel: tpu_custom_call.1
= control target key start
LH: loop header
LB: loop body
LE: loop exit
PB: predicated region body
PF: predicated region fallthrough
CT: control target
= control target key end

     0   :  { %7 = vsyncpa [#allocation3], 0  ;;  %s185_s0 = inlined_call_operand.hbm [shape: f32[2,1,256], index: 0, kind: input, shape index: {}]   ;;  %s186_s1 = inlined_call_operand.hbm [shape: f32[1,256], index: 1, kind: input, shape index: {}]   ;;  %s187_s2 = inlined_call_operand.hbm [shape: f32[2,1,256], index: 2, kind: output, shape index: {}]  }
   0x1   :  { %8 = vsyncpa [#allocation6], 0 }
   0x2   :  { %9 = vsyncpa [#allocation4], 0  ;;  %s14_s11 = sshll.u32 %s185_s0, 4  ;;  %s156_s12 = smov [#allocation2]   ;;  %s15_s11 = int_to_ptr.hbm [resolvable:$true] %s14_s11 }
   0x3   :  { %s16_s13 = sshll.u32 %s156_s12, 4  ;;  %s28_s16 = sshll.u32 %s186_s1, 4  ;;  %s17_s13 = int_to_ptr.vmem [resolvable:$true] %s16_s13  ;;  %s29_s16 = int_to_ptr.hbm [resolvable:$true] %s28_s16 }
   0x4   :  { %s157_s17 = smov 32   ;;  %s158_s18 = smov 2  }
   0x5   :  { %22 = dma.hbm_to_vmem [thread:$0]  %s15_s11, 64, %s17_s13, [#allocation3], %s157_s17, %s157_s17, %s158_s18  }
   0x6   :  { %s159_s19 = smov [#allocation5]  }
   0x7   :  { %s30_s20 = sshll.u32 %s159_s19, 4  ;;  %s31_s20 = int_to_ptr.vmem [resolvable:$true] %s30_s20 }
   0x8   :  { %33 = dma.hbm_to_vmem [thread:$0]  %s29_s16, 32, %s31_s20, [#allocation6]  }
   0x9   :  { %150 = dma.done.wait [#allocation3], 64  }
   0xa   :  { %151 = vsyncadd [#allocation3], 4294967232 }
   0xb   :  { %152 = dma.done.wait [#allocation6], 32  }
   0xc   :  { %153 = vsyncadd [#allocation6], 4294967264  ;;  %v47_v0 = vlaneseq  ;;  %s160_s0 = smov [#allocation7]   ;;  %s59_s1 = sshll.u32 %s187_s2, 4  ;;  %v42_v1 = vld [vmem:[#allocation2] sm:$0x3]  ;;  %s60_s1 = int_to_ptr.hbm [resolvable:$true] %s59_s1 }
   0xd   :  { %s57_s21 = sshll.u32 %s160_s0, 4  ;;  %v44_v2 = vld [vmem:[#allocation5] sm:$0x3]  ;;  %v43_v3 = vld [vmem:[#allocation2 + $0x2] sm:$0x3]  ;;  %s58_s21 = int_to_ptr.vmem [resolvable:$true] %s57_s21 }
   0xe   :  { %vm49_vm0 = vcmp.lt.s32.totalorder %v47_v0, 256  ;;  %v45_v4 = vadd.f32 %v44_v2, %v42_v1  ;;  %v46_v5 = vadd.f32 %v44_v2, %v43_v3 }
  0x10   :  { %51 = vst.msk [vmem:[#allocation7] sm:$0x3] %vm49_vm0, %v45_v4 }
  0x11   :  { %52 = vst.msk [vmem:[#allocation7 + $0x2] sm:$0x3] %vm49_vm0, %v46_v5 }
  0x12   :  { %65 = dma.vmem_to_hbm [thread:$0]  %s58_s21, 64, %s60_s1, [#allocation4], %s157_s17, %s157_s17, %s158_s18  }
  0x13   :  { %154 = dma.done.wait [#allocation4], 64  }
  0x14   :  { %155 = vsyncadd [#allocation4], 4294967232 }
  0x15   :  { %70 = vsyncpa [#allocation3], 1 }
  0x16   :  { %71 = vsyncpa [#allocation6], 1 }
  0x17   :  { %72 = vsyncpa [#allocation4], 1 }

</bundles_post_ra>
